<compile_context>
chip_gen: v5e
topology: v5e:2x2
jax: 0.10.0
libtpu: 0.0.40
codegen_flags: <defaults>
</compile_context>

<pallas_src>
import jax
import jax.numpy as jnp
from jax.experimental import pallas as pl
from jax.experimental.pallas import tpu as pltpu


def _round_up(x, m):
    return ((x + m - 1) // m) * m


def _mlp_predictor_kernel(src_ref, dst_ref, w1a_ref, w1b_ref, b1_ref,
                          w2_ref, b2_ref, out_ref):
    # hidden^T = W1a @ src^T + W1b @ dst^T + b1      -> (H, TM), f32 accum.
    # (contract both operands on their last dim == feature dim: A @ B^T.)
    dn = (((1,), (1,)), ((), ()))
    hidden = (
        jax.lax.dot_general(w1a_ref[...], src_ref[...], dn,
                            preferred_element_type=jnp.float32)
        + jax.lax.dot_general(w1b_ref[...], dst_ref[...], dn,
                              preferred_element_type=jnp.float32)
        + b1_ref[...]                                   # (H, 1) -> broadcast
    )
    hidden = jnp.maximum(hidden, 0.0)
    # score row = sum_h W2[h] * hidden[h, :] + b2     -> (1, TM), lane-dense.
    score = jnp.sum(hidden * w2_ref[...], axis=0, keepdims=True) + b2_ref[0]
    out_ref[...] = score.astype(out_ref.dtype)


def mlp_predictor_scores(src_h, dst_h, W1, b1, W2, b2, *,
                         tile_e=4096, compute_dtype=None):
    """Per-edge scores: W2(relu(W1(concat(src_h, dst_h)))).squeeze(1).

    src_h, dst_h : [E, H]   gathered endpoint features
    W1 : [H, 2H], b1 : [H]  (PyTorch nn.Linear(2H, H) layout: [out, in])
    W2 : [1, H],  b2 : [1]  (nn.Linear(H, 1))
    compute_dtype: dtype fed to the MXU.  Default: src_h.dtype (no extra
                   wrapper-side cast pass).  Accumulation is always f32.
    Returns [E] float32 scores.
    """
    E, H = src_h.shape
    assert dst_h.shape == (E, H)

    if compute_dtype is None:
        compute_dtype = src_h.dtype

    # Edge-dimension tiling; tile size is a multiple of 128 so the (1, TM)
    # output slab is lane-dense.  Pad E up so the grid divides evenly
    # (padded rows produce garbage scores that are sliced off below; the pad
    # is a no-op / fuses away when E is already aligned).
    tm = min(int(tile_e), _round_up(max(E, 1), 128))
    tm = _round_up(tm, 128)
    e_pad = _round_up(max(E, 1), tm)
    grid = (e_pad // tm,)

    pad = ((0, e_pad - E), (0, 0))
    src_p = jnp.pad(src_h, pad).astype(compute_dtype)
    dst_p = jnp.pad(dst_h, pad).astype(compute_dtype)

    # Split W1 ([out, in]) into the halves acting on src / dst features.
    # Weights are tiny; casting them wrapper-side is free.
    w1a = W1[:, :H].astype(compute_dtype)          # [H, H]
    w1b = W1[:, H:].astype(compute_dtype)          # [H, H]
    b1_col = b1.reshape(H, 1).astype(jnp.float32)  # [H, 1]
    w2_col = W2.reshape(H, 1).astype(jnp.float32)  # [H, 1]
    b2_s = b2.reshape(1).astype(jnp.float32)       # [1]  -> SMEM scalar

    out = pl.pallas_call(
        _mlp_predictor_kernel,
        out_shape=jax.ShapeDtypeStruct((1, e_pad), jnp.float32),
        grid=grid,
        in_specs=[
            pl.BlockSpec((tm, H), lambda i: (i, 0)),            # src tile
            pl.BlockSpec((tm, H), lambda i: (i, 0)),            # dst tile
            pl.BlockSpec((H, H), lambda i: (0, 0)),             # W1a resident
            pl.BlockSpec((H, H), lambda i: (0, 0)),             # W1b resident
            pl.BlockSpec((H, 1), lambda i: (0, 0)),             # b1 resident
            pl.BlockSpec((H, 1), lambda i: (0, 0)),             # W2 resident
            pl.BlockSpec(memory_space=pltpu.MemorySpace.SMEM),  # b2 scalar
        ],
        out_specs=pl.BlockSpec((1, tm), lambda i: (0, i)),
        compiler_params=pltpu.CompilerParams(
            dimension_semantics=("parallel",)),
    )(src_p, dst_p, w1a, w1b, b1_col, w2_col, b2_s)

    return out[0, :E]


def reference_scores(src_h, dst_h, W1, b1, W2, b2):
    h = jnp.concatenate([src_h, dst_h], axis=1)
    hid = jnp.maximum(h @ W1.T + b1, 0.0)
    return (hid @ W2.T + b2)[:, 0]


if __name__ == "__main__":
    key = jax.random.PRNGKey(0)
    h_feats = 32
    num_nodes = 16
    num_edges = 8

    k_h, k_src, k_dst, k_w1, k_b1, k_w2, k_b2 = jax.random.split(key, 7)

    # Node features and a synthetic edge list (the "graph").
    h = jax.random.normal(k_h, (num_nodes, h_feats), dtype=jnp.float32)
    src_idx = jax.random.randint(k_src, (num_edges,), 0, num_nodes)
    dst_idx = jax.random.randint(k_dst, (num_edges,), 0, num_nodes)

    # Deterministic parameter init mimicking nn.Linear defaults
    # (uniform(-1/sqrt(fan_in), 1/sqrt(fan_in))).
    fan1 = 2 * h_feats
    bound1 = 1.0 / jnp.sqrt(fan1)
    W1 = jax.random.uniform(k_w1, (h_feats, 2 * h_feats),
                            minval=-bound1, maxval=bound1, dtype=jnp.float32)
    b1 = jax.random.uniform(k_b1, (h_feats,),
                            minval=-bound1, maxval=bound1, dtype=jnp.float32)
    fan2 = h_feats
    bound2 = 1.0 / jnp.sqrt(fan2)
    W2 = jax.random.uniform(k_w2, (1, h_feats),
                            minval=-bound2, maxval=bound2, dtype=jnp.float32)
    b2 = jax.random.uniform(k_b2, (1,),
                            minval=-bound2, maxval=bound2, dtype=jnp.float32)

    # Glue: gather endpoint features (equivalent of edges.src['h']/dst['h']).
    src_h = h[src_idx]
    dst_h = h[dst_idx]

    ref = reference_scores(src_h, dst_h, W1, b1, W2, b2)

    # f32 path — exact module semantics.
    scores = mlp_predictor_scores(src_h, dst_h, W1, b1, W2, b2)
    scores = jax.block_until_ready(scores)
    assert scores.shape == (num_edges,)
    assert jnp.allclose(scores, ref, atol=1e-5, rtol=1e-5), (scores, ref)

    # bf16-activation path (halves HBM traffic of the memory-bound feature
    # loads when upstream activations are already bf16; f32 accumulation).
    h_bf16 = h.astype(jnp.bfloat16)
    scores_bf16 = mlp_predictor_scores(h_bf16[src_idx], h_bf16[dst_idx],
                                       W1, b1, W2, b2)
    scores_bf16 = jax.block_until_ready(scores_bf16)
    assert scores_bf16.shape == (num_edges,)
    assert jnp.allclose(scores_bf16, ref, atol=5e-2, rtol=5e-2), (
        scores_bf16, ref)

    print("KERNEL_OK")
</pallas_src>

<mosaic_0001>
module attributes {stable_mosaic.version = 11 : i64} {
  func.func @_mlp_predictor_kernel(%arg0: i32, %arg1: memref<128x32xf32, #tpu.memory_space<vmem>>, %arg2: memref<128x32xf32, #tpu.memory_space<vmem>>, %arg3: memref<32x32xf32, #tpu.memory_space<vmem>>, %arg4: memref<32x32xf32, #tpu.memory_space<vmem>>, %arg5: memref<32x1xf32, #tpu.memory_space<vmem>>, %arg6: memref<32x1xf32, #tpu.memory_space<vmem>>, %arg7: memref<1xf32, #tpu.memory_space<smem>>, %arg8: memref<1x128xf32, #tpu.memory_space<vmem>>) attributes {dimension_semantics = [#tpu.dimension_semantics<parallel>], iteration_bounds = array<i64: 1>, scalar_prefetch = 0 : i64, scratch_operands = 0 : i64, tpu.core_type = #tpu.core_type<tc>, window_params = [{transform_indices = @transform_0, window_bounds = array<i64: 128, 32>}, {transform_indices = @transform_1, window_bounds = array<i64: 128, 32>}, {pipeline_mode = #tpu.pipeline_mode<synchronous>, transform_indices = @transform_2, window_bounds = array<i64: 32, 32>}, {pipeline_mode = #tpu.pipeline_mode<synchronous>, transform_indices = @transform_3, window_bounds = array<i64: 32, 32>}, {pipeline_mode = #tpu.pipeline_mode<synchronous>, transform_indices = @transform_4, window_bounds = array<i64: 32, 1>}, {pipeline_mode = #tpu.pipeline_mode<synchronous>, transform_indices = @transform_5, window_bounds = array<i64: 32, 1>}, {transform_indices = @transform_6, window_bounds = array<i64: 1>}, {transform_indices = @transform_7, window_bounds = array<i64: 1, 128>}]} {
    %c0 = arith.constant 0 : index
    %c0_0 = arith.constant 0 : index
    %0 = vector.load %arg3[%c0, %c0_0] : memref<32x32xf32, #tpu.memory_space<vmem>>, vector<32x32xf32>
    %c0_1 = arith.constant 0 : index
    %c0_2 = arith.constant 0 : index
    %1 = vector.load %arg1[%c0_1, %c0_2] : memref<128x32xf32, #tpu.memory_space<vmem>>, vector<128x32xf32>
    %cst = arith.constant dense<0.000000e+00> : vector<32x128xf32>
    %2 = tpu.matmul %0, %1, %cst {dimension_numbers = #tpu.dot_dimension_numbers<[1], [1], [0], [0], [0, 0, 1, 0], [], []>} : vector<32x32xf32>, vector<128x32xf32>, vector<32x128xf32> -> vector<32x128xf32>
    %c0_3 = arith.constant 0 : index
    %c0_4 = arith.constant 0 : index
    %3 = vector.load %arg4[%c0_3, %c0_4] : memref<32x32xf32, #tpu.memory_space<vmem>>, vector<32x32xf32>
    %c0_5 = arith.constant 0 : index
    %c0_6 = arith.constant 0 : index
    %4 = vector.load %arg2[%c0_5, %c0_6] : memref<128x32xf32, #tpu.memory_space<vmem>>, vector<128x32xf32>
    %cst_7 = arith.constant dense<0.000000e+00> : vector<32x128xf32>
    %5 = tpu.matmul %3, %4, %cst_7 {dimension_numbers = #tpu.dot_dimension_numbers<[1], [1], [0], [0], [0, 0, 1, 0], [], []>} : vector<32x32xf32>, vector<128x32xf32>, vector<32x128xf32> -> vector<32x128xf32>
    %6 = arith.addf %2, %5 : vector<32x128xf32>
    %c0_8 = arith.constant 0 : index
    %c0_9 = arith.constant 0 : index
    %7 = vector.load %arg5[%c0_8, %c0_9] : memref<32x1xf32, #tpu.memory_space<vmem>>, vector<32x1xf32>
    %8 = vector.broadcast %7 : vector<32x1xf32> to vector<32x128xf32>
    %9 = arith.addf %6, %8 : vector<32x128xf32>
    %cst_10 = arith.constant 0.000000e+00 : f32
    %10 = vector.broadcast %cst_10 : f32 to vector<32x128xf32>
    %11 = arith.maximumf %9, %10 : vector<32x128xf32>
    %c0_11 = arith.constant 0 : index
    %c0_12 = arith.constant 0 : index
    %12 = vector.load %arg6[%c0_11, %c0_12] : memref<32x1xf32, #tpu.memory_space<vmem>>, vector<32x1xf32>
    %13 = vector.broadcast %12 : vector<32x1xf32> to vector<32x128xf32>
    %14 = arith.mulf %11, %13 : vector<32x128xf32>
    %cst_13 = arith.constant dense<0.000000e+00> : vector<128xf32>
    %15 = vector.multi_reduction <add>, %14, %cst_13 [0] : vector<32x128xf32> to vector<128xf32>
    %16 = vector.shape_cast %15 : vector<128xf32> to vector<1x128xf32>
    %c0_14 = arith.constant 0 : index
    %17 = memref.load %arg7[%c0_14] : memref<1xf32, #tpu.memory_space<smem>>
    %18 = vector.broadcast %17 : f32 to vector<1x128xf32>
    %19 = arith.addf %16, %18 : vector<1x128xf32>
    %c0_15 = arith.constant 0 : index
    %c0_16 = arith.constant 0 : index
    %20 = vector.load %arg8[%c0_15, %c0_16] : memref<1x128xf32, #tpu.memory_space<vmem>>, vector<1x128xf32>
    tpu.vector_store %arg8[%c0_15, %c0_16], %19 {strides = array<i32>} : memref<1x128xf32, #tpu.memory_space<vmem>>, vector<1x128xf32>,
    return
  }
  func.func @transform_0(%arg0: i32) -> (i32, i32) {
    %c0_i32 = arith.constant 0 : i32
    %c0_i32_0 = arith.constant 0 : i32
    return %arg0, %c0_i32 : i32, i32
  }
  func.func @transform_1(%arg0: i32) -> (i32, i32) {
    %c0_i32 = arith.constant 0 : i32
    %c0_i32_0 = arith.constant 0 : i32
    return %arg0, %c0_i32 : i32, i32
  }
  func.func @transform_2(%arg0: i32) -> (i32, i32) {
    %c0_i32 = arith.constant 0 : i32
    %c0_i32_0 = arith.constant 0 : i32
    %c0_i32_1 = arith.constant 0 : i32
    return %c0_i32, %c0_i32_0 : i32, i32
  }
  func.func @transform_3(%arg0: i32) -> (i32, i32) {
    %c0_i32 = arith.constant 0 : i32
    %c0_i32_0 = arith.constant 0 : i32
    %c0_i32_1 = arith.constant 0 : i32
    return %c0_i32, %c0_i32_0 : i32, i32
  }
  func.func @transform_4(%arg0: i32) -> (i32, i32) {
    %c0_i32 = arith.constant 0 : i32
    %c0_i32_0 = arith.constant 0 : i32
    %c0_i32_1 = arith.constant 0 : i32
    return %c0_i32, %c0_i32_0 : i32, i32
  }
  func.func @transform_5(%arg0: i32) -> (i32, i32) {
    %c0_i32 = arith.constant 0 : i32
    %c0_i32_0 = arith.constant 0 : i32
    %c0_i32_1 = arith.constant 0 : i32
    return %c0_i32, %c0_i32_0 : i32, i32
  }
  func.func @transform_6(%arg0: i32) -> i32 {
    %c0_i32 = arith.constant 0 : i32
    %c0_i32_0 = arith.constant 0 : i32
    return %c0_i32 : i32
  }
  func.func @transform_7(%arg0: i32) -> (i32, i32) {
    %c0_i32 = arith.constant 0 : i32
    %c0_i32_0 = arith.constant 0 : i32
    return %c0_i32, %arg0 : i32, i32
  }
}

</mosaic_0001>

<bundles_post_ra>
// kernel: tpu_custom_call.1
= control target key start
LH: loop header
LB: loop body
LE: loop exit
PB: predicated region body
PF: predicated region fallthrough
CT: control target
= control target key end

     0   :  { %vm68_vm0 = vcmask 261120   ;;  %s703_s0 = inlined_call_operand.vmem [shape: f32[128,32], index: 0, kind: input, shape index: {}]   ;;  %s704_s1 = inlined_call_operand.vmem [shape: f32[128,32], index: 1, kind: input, shape index: {}]   ;;  %s705_s2 = inlined_call_operand.vmem [shape: f32[32,32], index: 2, kind: input, shape index: {}]   ;;  %s706_s3 = inlined_call_operand.vmem [shape: f32[32,32], index: 3, kind: input, shape index: {}]   ;;  %s707_s4 = inlined_call_operand.vmem [shape: f32[32,1], index: 4, kind: input, shape index: {}]   ;;  %s708_s5 = inlined_call_operand.vmem [shape: f32[32,1], index: 5, kind: input, shape index: {}]   ;;  %s709_s6 = inlined_call_operand.<no memory space> [shape: f32[1], index: 6, kind: input, shape index: {}]   ;;  %s710_s7 = inlined_call_operand.hbm [shape: f32[1,128], index: 7, kind: output, shape index: {}]  }
   0x1   :  { %v67_v0 = vld [vmem:[%s704_s1 + $0x78] sm:$0xff]  ;;  %v66_v2 = vld [vmem:[%s704_s1 + $0x70] sm:$0xff]  ;;  %v65_v4 = vld [vmem:[%s704_s1 + $0x68] sm:$0xff] }
   0x2   :  { %v47_v1 = vld [vmem:[%s703_s0 + $0x78] sm:$0xff]  ;;  %336 = vmatpush.xpose.msk.msra.mxu0 %vm68_vm0, %v67_v0  ;;  %376 = vmatpush.xpose.msk.msra.mxu2 %vm68_vm0, %v67_v0  ;;  %v46_v3 = vld [vmem:[%s703_s0 + $0x70] sm:$0xff]  ;;  %v45_v5 = vld [vmem:[%s703_s0 + $0x68] sm:$0xff] }
   0x3   :  { %356 = vmatpush.xpose.msk.msra.mxu1 %vm68_vm0, %v47_v1  ;;  %392 = vmatpush.xpose.msk.msra.mxu3 %vm68_vm0, %v47_v1 }
   0x6   :  { %337 = vmatpush.xpose.msk.msra.mxu0 %vm68_vm0, %v66_v2  ;;  %377 = vmatpush.xpose.msk.msra.mxu2 %vm68_vm0, %v66_v2 }
   0x7   :  { %357 = vmatpush.xpose.msk.msra.mxu1 %vm68_vm0, %v46_v3  ;;  %393 = vmatpush.xpose.msk.msra.mxu3 %vm68_vm0, %v46_v3 }
   0x8   :  { %13 = vsyncpa [#allocation4], 0  ;;  %v64_v6 = vld [vmem:[%s704_s1 + $0x60] sm:$0xff]  ;;  %v63_v8 = vld [vmem:[%s704_s1 + $0x58] sm:$0xff]  ;;  %v439_v17 = vmov 0   ;;  %s440_s23 = smov [#allocation3]  }
   0x9   :  { %v44_v7 = vld [vmem:[%s703_s0 + $0x60] sm:$0xff]  ;;  %v43_v9 = vld [vmem:[%s703_s0 + $0x58] sm:$0xff]  ;;  %v62_v10 = vld [vmem:[%s704_s1 + $0x50] sm:$0xff]  ;;  %410 = vset.pattern.permute.xlu0 %v439_v17  ;;  %411 = vset.pattern.permute.xlu1 %v439_v17  ;;  %s325_s24 = sshll.u32 %s440_s23, 4  ;;  %s327_s26 = sshll.u32 %s710_s7, 4  ;;  %s326_s24 = int_to_ptr.vmem [resolvable:$true] %s325_s24  ;;  %s328_s26 = int_to_ptr.hbm [resolvable:$true] %s327_s26 }
   0xa   :  { %338 = vmatpush.xpose.msk.msra.mxu0 %vm68_vm0, %v65_v4  ;;  %378 = vmatpush.xpose.msk.msra.mxu2 %vm68_vm0, %v65_v4  ;;  %v42_v11 = vld [vmem:[%s703_s0 + $0x50] sm:$0xff]  ;;  %v61_v12 = vld [vmem:[%s704_s1 + $0x48] sm:$0xff]  ;;  %v60_v14 = vld [vmem:[%s704_s1 + $0x40] sm:$0xff] }
   0xb   :  { %358 = vmatpush.xpose.msk.msra.mxu1 %vm68_vm0, %v45_v5  ;;  %394 = vmatpush.xpose.msk.msra.mxu3 %vm68_vm0, %v45_v5  ;;  %v41_v13 = vld [vmem:[%s703_s0 + $0x48] sm:$0xff]  ;;  %v247_v15 = vld [vmem:[%s707_s4] sm:$0xff]  ;;  %v59_v18 = vld [vmem:[%s704_s1 + $0x38] sm:$0xff] }
   0xc   :  { %v40_v16 = vld [vmem:[%s703_s0 + $0x40] sm:$0xff]  ;;  %253 = vperm.xlu0 %410, %v247_v15   ;;  %412 = vset.pattern.permute.xlu2 %v439_v17  ;;  %v249_v19 = vld [vmem:[%s707_s4 + $0x10] sm:$0xff]  ;;  %v39_v20 = vld [vmem:[%s703_s0 + $0x38] sm:$0xff] }
   0xd   :  { %263 = vperm.xlu1 %411, %v249_v19   ;;  %v248_v21 = vld [vmem:[%s707_s4 + $0x8] sm:$0xff]  ;;  %v58_v22 = vld [vmem:[%s704_s1 + $0x30] sm:$0xff]  ;;  %v250_v24 = vld [vmem:[%s707_s4 + $0x18] sm:$0xff] }
   0xe   :  { %339 = vmatpush.xpose.msk.msra.mxu0 %vm68_vm0, %v64_v6  ;;  %379 = vmatpush.xpose.msk.msra.mxu2 %vm68_vm0, %v64_v6  ;;  %v38_v23 = vld [vmem:[%s703_s0 + $0x30] sm:$0xff]  ;;  %v57_v25 = vld [vmem:[%s704_s1 + $0x28] sm:$0xff]  ;;  %v279_v28 = vld [vmem:[%s708_s5] sm:$0xff] }
   0xf   :  { %359 = vmatpush.xpose.msk.msra.mxu1 %vm68_vm0, %v44_v7  ;;  %395 = vmatpush.xpose.msk.msra.mxu3 %vm68_vm0, %v44_v7  ;;  %v37_v26 = vld [vmem:[%s703_s0 + $0x28] sm:$0xff]  ;;  %v281_v27 = vld [vmem:[%s708_s5 + $0x10] sm:$0xff]  ;;  %v56_v29 = vld [vmem:[%s704_s1 + $0x20] sm:$0xff] }
  0x10   :  { %v36_v30 = vld [vmem:[%s703_s0 + $0x20] sm:$0xff]  ;;  %285 = vperm.xlu2 %412, %v279_v28   ;;  %v282_v31 = vld [vmem:[%s708_s5 + $0x18] sm:$0xff]  ;;  %v280_v34 = vld [vmem:[%s708_s5 + $0x8] sm:$0xff] }
  0x11   :  { %v55_v32 = vld [vmem:[%s704_s1 + $0x18] sm:$0xff]  ;;  %v54_v35 = vld [vmem:[%s704_s1 + $0x10] sm:$0xff]  ;;  %v53_v37 = vld [vmem:[%s704_s1 + $0x8] sm:$0xff] }
  0x12   :  { %340 = vmatpush.xpose.msk.msra.mxu0 %vm68_vm0, %v63_v8  ;;  %380 = vmatpush.xpose.msk.msra.mxu2 %vm68_vm0, %v63_v8  ;;  %v35_v33 = vld [vmem:[%s703_s0 + $0x18] sm:$0xff]  ;;  %v34_v36 = vld [vmem:[%s703_s0 + $0x10] sm:$0xff]  ;;  %v33_v38 = vld [vmem:[%s703_s0 + $0x8] sm:$0xff] }
  0x13   :  { %360 = vmatpush.xpose.msk.msra.mxu1 %vm68_vm0, %v43_v9  ;;  %396 = vmatpush.xpose.msk.msra.mxu3 %vm68_vm0, %v43_v9  ;;  %v52_v39 = vld [vmem:[%s704_s1] sm:$0xff]  ;;  %v50_v42 = vld [vmem:[%s706_s3 + $0x10] sm:$0xff]  ;;  %v49_v45 = vld [vmem:[%s706_s3 + $0x8] sm:$0xff] }
  0x14   :  { %258 = vperm.xlu0 %410, %v248_v21   ;;  %v32_v40 = vld [vmem:[%s703_s0] sm:$0xff]  ;;  %v30_v44 = vld [vmem:[%s705_s2 + $0x10] sm:$0xff]  ;;  %v51_v46 = vld [vmem:[%s706_s3 + $0x18] sm:$0xff] }
  0x15   :  { %268 = vperm.xlu1 %411, %v250_v24   ;;  %v48_v41 = vld [vmem:[%s706_s3] sm:$0xff]  ;;  %v29_v47 = vld [vmem:[%s705_s2 + $0x8] sm:$0xff]  ;;  %v31_v48 = vld [vmem:[%s705_s2 + $0x18] sm:$0xff] }
  0x16   :  { %341 = vmatpush.xpose.msk.msra.mxu0 %vm68_vm0, %v62_v10  ;;  %381 = vmatpush.xpose.msk.msra.mxu2 %vm68_vm0, %v62_v10  ;;  %v28_v43 = vld [vmem:[%s705_s2] sm:$0xff] }
  0x17   :  { %361 = vmatpush.xpose.msk.msra.mxu1 %vm68_vm0, %v42_v11  ;;  %397 = vmatpush.xpose.msk.msra.mxu3 %vm68_vm0, %v42_v11 }
  0x18   :  { %290 = vperm.xlu2 %412, %v280_v34  }
  0x1a   :  { %342 = vmatpush.xpose.msk.msra.mxu0 %vm68_vm0, %v61_v12  ;;  %382 = vmatpush.xpose.msk.msra.mxu2 %vm68_vm0, %v61_v12 }
  0x1b   :  { %362 = vmatpush.xpose.msk.msra.mxu1 %vm68_vm0, %v41_v13  ;;  %398 = vmatpush.xpose.msk.msra.mxu3 %vm68_vm0, %v41_v13 }
  0x1c   :  { %295 = vperm.xlu0 %410, %v281_v27  }
  0x1d   :  { %300 = vperm.xlu1 %411, %v282_v31  }
  0x1e   :  { %343 = vmatpush.xpose.msk.msra.mxu0 %vm68_vm0, %v60_v14  ;;  %383 = vmatpush.xpose.msk.msra.mxu2 %vm68_vm0, %v60_v14 }
  0x1f   :  { %363 = vmatpush.xpose.msk.msra.mxu1 %vm68_vm0, %v40_v16  ;;  %399 = vmatpush.xpose.msk.msra.mxu3 %vm68_vm0, %v40_v16 }
  0x22   :  { %344 = vmatpush.xpose.msk.msra.mxu0 %vm68_vm0, %v59_v18  ;;  %384 = vmatpush.xpose.msk.msra.mxu2 %vm68_vm0, %v59_v18 }
  0x23   :  { %364 = vmatpush.xpose.msk.msra.mxu1 %vm68_vm0, %v39_v20  ;;  %400 = vmatpush.xpose.msk.msra.mxu3 %vm68_vm0, %v39_v20 }
  0x26   :  { %345 = vmatpush.xpose.msk.msra.mxu0 %vm68_vm0, %v58_v22  ;;  %385 = vmatpush.xpose.msk.msra.mxu2 %vm68_vm0, %v58_v22 }
  0x27   :  { %365 = vmatpush.xpose.msk.msra.mxu1 %vm68_vm0, %v38_v23  ;;  %401 = vmatpush.xpose.msk.msra.mxu3 %vm68_vm0, %v38_v23 }
  0x2a   :  { %346 = vmatpush.xpose.msk.msra.mxu0 %vm68_vm0, %v57_v25  ;;  %386 = vmatpush.xpose.msk.msra.mxu2 %vm68_vm0, %v57_v25  ;;  %v317_v25 = vstv %s709_s6 }
  0x2b   :  { %366 = vmatpush.xpose.msk.msra.mxu1 %vm68_vm0, %v37_v26  ;;  %402 = vmatpush.xpose.msk.msra.mxu3 %vm68_vm0, %v37_v26 }
  0x2e   :  { %347 = vmatpush.xpose.msk.msra.mxu0 %vm68_vm0, %v56_v29  ;;  %387 = vmatpush.xpose.msk.msra.mxu2 %vm68_vm0, %v56_v29 }
  0x2f   :  { %367 = vmatpush.xpose.msk.msra.mxu1 %vm68_vm0, %v36_v30  ;;  %403 = vmatpush.xpose.msk.msra.mxu3 %vm68_vm0, %v36_v30 }
  0x32   :  { %348 = vmatpush.xpose.msk.msra.mxu0 %vm68_vm0, %v55_v32  ;;  %388 = vmatpush.xpose.msk.msra.mxu2 %vm68_vm0, %v55_v32 }
  0x33   :  { %368 = vmatpush.xpose.msk.msra.mxu1 %vm68_vm0, %v35_v33  ;;  %404 = vmatpush.xpose.msk.msra.mxu3 %vm68_vm0, %v35_v33 }
  0x36   :  { %349 = vmatpush.xpose.msk.msra.mxu0 %vm68_vm0, %v54_v35  ;;  %389 = vmatpush.xpose.msk.msra.mxu2 %vm68_vm0, %v54_v35 }
  0x37   :  { %369 = vmatpush.xpose.msk.msra.mxu1 %vm68_vm0, %v34_v36  ;;  %405 = vmatpush.xpose.msk.msra.mxu3 %vm68_vm0, %v34_v36 }
  0x3a   :  { %350 = vmatpush.xpose.msk.msra.mxu0 %vm68_vm0, %v53_v37  ;;  %390 = vmatpush.xpose.msk.msra.mxu2 %vm68_vm0, %v53_v37 }
  0x3b   :  { %370 = vmatpush.xpose.msk.msra.mxu1 %vm68_vm0, %v33_v38  ;;  %406 = vmatpush.xpose.msk.msra.mxu3 %vm68_vm0, %v33_v38 }
  0x3e   :  { %351 = vmatpush.xpose.msk.msra.mxu0 %vm68_vm0, %v52_v39  ;;  %391 = vmatpush.xpose.msk.msra.mxu2 %vm68_vm0, %v52_v39 }
  0x3f   :  { %371 = vmatpush.xpose.msk.msra.mxu1 %vm68_vm0, %v32_v40  ;;  %407 = vmatpush.xpose.msk.msra.mxu3 %vm68_vm0, %v32_v40 }
  0x41   :  { %352 = vmatmul.msk.f32.vlgmr.msra.gmra.mxu0 %vm68_vm0, %v48_v41  ;;  %354 = vmatmul.msk.f32.vlgmr.msra.gmra.mxu2 %vm68_vm0, %v50_v42 }
  0x42   :  { %372 = vmatmul.msk.f32.vlgmr.msra.gmra.mxu1 %vm68_vm0, %v28_v43  ;;  %374 = vmatmul.msk.f32.vlgmr.msra.gmra.mxu3 %vm68_vm0, %v30_v44 }
  0x49   :  { %353 = vmatmul.msk.f32.gmra.mxu0 %vm68_vm0, %v49_v45  ;;  %355 = vmatmul.msk.f32.gmra.mxu2 %vm68_vm0, %v51_v46 }
  0x4a   :  { %373 = vmatmul.msk.f32.gmra.mxu1 %vm68_vm0, %v29_v47  ;;  %375 = vmatmul.msk.f32.gmra.mxu3 %vm68_vm0, %v31_v48 }
  0x6a   :  { %v286_v54 = vpop.permute.xlu2 %285 }
  0x72   :  { %v291_v5 = vpop.permute.xlu2 %290 }
  0x7e   :  { %v254_v49 = vpop.permute.xlu0 %253 }
  0x7f   :  { %v264_v51 = vpop.permute.xlu1 %263 }
  0x86   :  { %v259_v60 = vpop.permute.xlu0 %258 }
  0x87   :  { %v269_v63 = vpop.permute.xlu1 %268 }
  0x8e   :  { %v296_v13 = vpop.permute.xlu0 %295 }
  0x8f   :  { %v301_v16 = vpop.permute.xlu1 %300 }
  0xbe   :  { %v146_v50 = vpop.f32.mrf.mxu0 }
  0xbf   :  { %v235_v52 = vpop.f32.mrf.mxu1 }
  0xc0   :  { %v236_v53 = vadd.f32 %v235_v52, %v146_v50 }
  0xc2   :  { %v271_v57 = vadd.f32 %v254_v49, %v236_v53 }
  0xc4   :  { %v152_v55 = vpop.f32.mrf.mxu2  ;;  %v275_v0 = vmax.f32 %v271_v57, 0.0 }
  0xc5   :  { %v241_v56 = vpop.f32.mrf.mxu3 }
  0xc6   :  { %v242_v58 = vadd.f32 %v241_v56, %v152_v55  ;;  %v149_v59 = vpop.f32.mrf.mxu0  ;;  %v303_v7 = vmul.f32 %v286_v54, %v275_v0 }
  0xc7   :  { %v238_v61 = vpop.f32.mrf.mxu1 }
  0xc8   :  { %v239_v62 = vadd.f32 %v238_v61, %v149_v59  ;;  %v273_v1 = vadd.f32 %v264_v51, %v242_v58 }
  0xca   :  { %v272_v2 = vadd.f32 %v259_v60, %v239_v62  ;;  %v277_v8 = vmax.f32 %v273_v1, 0.0 }
  0xcc   :  { %v276_v3 = vmax.f32 %v272_v2, 0.0  ;;  %v155_v4 = vpop.f32.mrf.mxu2  ;;  %v305_v14 = vmul.f32 %v296_v13, %v277_v8 }
  0xcd   :  { %v244_v6 = vpop.f32.mrf.mxu3 }
  0xce   :  { %v304_v9 = vmul.f32 %v291_v5, %v276_v3  ;;  %v245_v10 = vadd.f32 %v244_v6, %v155_v4 }
  0xd0   :  { %v307_v11 = vadd.f32 %v304_v9, %v303_v7  ;;  %v274_v12 = vadd.f32 %v269_v63, %v245_v10 }
  0xd2   :  { %v278_v15 = vmax.f32 %v274_v12, 0.0  ;;  %v308_v18 = vadd.f32 %v307_v11, %v305_v14 }
  0xd4   :  { %v306_v17 = vmul.f32 %v301_v16, %v278_v15 }
  0xd6   :  { %v309_v19 = vadd.f32 %v308_v18, %v306_v17 }
  0xd8   :  { %v310_v20 = vrot.slane %v309_v19, 4 }
  0xda   :  { %v311_v21 = vadd.f32 %v310_v20, %v309_v19 }
  0xdc   :  { %v312_v22 = vrot.slane %v311_v21, 2 }
  0xde   :  { %v313_v23 = vadd.f32 %v312_v22, %v311_v21 }
  0xe0   :  { %v314_v24 = vrot.slane %v313_v23, 1 }
  0xe2   :  { %v315_v26 = vadd.f32 %v314_v24, %v313_v23 }
  0xe4   :  { %v318_v27 = vadd.f32 %v317_v25, %v315_v26 }
  0xe6   :  { %319 = vst [vmem:[#allocation3] sm:$0x1] %v318_v27 }
  0xe7   :  { %330 = dma.vmem_to_hbm [thread:$0]  %s326_s24, 16, %s328_s26, [#allocation4]  }
  0xe8   :  { %437 = dma.done.wait [#allocation4], 16  }
  0xe9   :  { %438 = vsyncadd [#allocation4], 4294967280 }
  0xea   :  { %335 = vsyncpa [#allocation4], 1 }

</bundles_post_ra>
